<compile_context>
chip_gen: v5e
topology: v5e:2x2
jax: 0.10.0
libtpu: 0.0.40
codegen_flags: <defaults>
</compile_context>

<pallas_src>
import jax
import jax.numpy as jnp
from jax.experimental import pallas as pl
from jax.experimental.pallas import tpu as pltpu

IN_DIM = 128
HID_DIM = 32
OUT_DIM = 6
DEFAULT_TB = 512  # batch rows per grid step (f32/bf16 tiles well within VMEM)


def _round_up(n, m):
    return ((n + m - 1) // m) * m


def mlp_kernel(x_ref, w1_ref, b1_ref, w2_ref, b2_ref, o_ref):
    # fc1: bf16 x / bf16 W1 into the MXU, f32 accumulation.
    h = jnp.dot(x_ref[...], w1_ref[...], preferred_element_type=jnp.float32)
    # bias-add + relu on the VPU in f32 (b1 is (1, HID) -> broadcasts).
    h = jnp.maximum(h + b1_ref[...], 0.0)
    # fc2 in f32.
    y = jnp.dot(h, w2_ref[...], preferred_element_type=jnp.float32)
    o_ref[...] = (y + b2_ref[...]).astype(o_ref.dtype)


def classification_model(x, w1, b1, w2, b2, *, tb=DEFAULT_TB):
    B = x.shape[0]

    # bf16 storage for the HBM-dominant operands (x, W1); halves read traffic.
    x_bf = x.astype(jnp.bfloat16)
    w1_bf = w1.astype(jnp.bfloat16)

    # Batch tile: multiple of 8 (sublane rule), capped at `tb`.
    tb_eff = min(tb, _round_up(B, 8))
    b_pad = _round_up(B, tb_eff)
    if b_pad != B:
        x_bf = jnp.pad(x_bf, ((0, b_pad - B), (0, 0)))
    grid = (b_pad // tb_eff,)

    flops = 2 * b_pad * (IN_DIM * HID_DIM + HID_DIM * OUT_DIM)
    bytes_accessed = (
        b_pad * IN_DIM * 2            # x (bf16)
        + IN_DIM * HID_DIM * 2        # W1 (bf16)
        + (HID_DIM + HID_DIM * OUT_DIM + OUT_DIM) * 4  # b1, W2, b2 (f32)
        + b_pad * OUT_DIM * 4         # output (f32)
    )

    out = pl.pallas_call(
        mlp_kernel,
        out_shape=jax.ShapeDtypeStruct((b_pad, OUT_DIM), jnp.float32),
        grid=grid,
        in_specs=[
            pl.BlockSpec((tb_eff, IN_DIM), lambda i: (i, 0)),       # x tile
            pl.BlockSpec((IN_DIM, HID_DIM), lambda i: (0, 0)),      # W1 resident
            pl.BlockSpec((1, HID_DIM), lambda i: (0, 0)),           # b1 resident
            pl.BlockSpec((HID_DIM, OUT_DIM), lambda i: (0, 0)),     # W2 resident
            pl.BlockSpec((1, OUT_DIM), lambda i: (0, 0)),           # b2 resident
        ],
        out_specs=pl.BlockSpec((tb_eff, OUT_DIM), lambda i: (i, 0)),
        compiler_params=pltpu.CompilerParams(
            dimension_semantics=("parallel",)),
        cost_estimate=pl.CostEstimate(
            flops=flops, transcendentals=0, bytes_accessed=bytes_accessed),
    )(x_bf, w1_bf, b1, w2, b2)

    return out[:B] if b_pad != B else out


def init_params(key):
    # PyTorch default nn.Linear init: uniform(-1/sqrt(fan_in), 1/sqrt(fan_in)).
    # Weights stored as (in, out) so the kernel does plain x @ W
    # (equivalent to PyTorch's x @ W.T with W (out, in)).
    k1, k2, k3, k4 = jax.random.split(key, 4)
    bound1 = 1.0 / jnp.sqrt(IN_DIM)
    bound2 = 1.0 / jnp.sqrt(HID_DIM)
    w1 = jax.random.uniform(k1, (IN_DIM, HID_DIM), jnp.float32, -bound1, bound1)
    b1 = jax.random.uniform(k2, (1, HID_DIM), jnp.float32, -bound1, bound1)
    w2 = jax.random.uniform(k3, (HID_DIM, OUT_DIM), jnp.float32, -bound2, bound2)
    b2 = jax.random.uniform(k4, (1, OUT_DIM), jnp.float32, -bound2, bound2)
    return w1, b1, w2, b2


def _ref(x, w1, b1, w2, b2):
    # Reference matching the kernel's numerics: bf16-quantized x/W1, f32 math.
    x32 = x.astype(jnp.bfloat16).astype(jnp.float32)
    w1_32 = w1.astype(jnp.bfloat16).astype(jnp.float32)
    return jnp.maximum(x32 @ w1_32 + b1, 0.0) @ w2 + b2


if __name__ == "__main__":
    key = jax.random.PRNGKey(0)
    kx, kp = jax.random.split(key)
    w1, b1, w2, b2 = init_params(kp)

    # Small, tile-aligned batch.
    B = 8
    x = jax.random.normal(kx, (B, IN_DIM), jnp.float32)
    out = jax.block_until_ready(classification_model(x, w1, b1, w2, b2))
    assert out.shape == (B, OUT_DIM)
    assert jnp.allclose(out, _ref(x, w1, b1, w2, b2), atol=1e-4, rtol=1e-4)

    # Ragged batch exercises the pad-and-slice tail handling.
    B2 = 13
    x2 = jax.random.normal(jax.random.PRNGKey(1), (B2, IN_DIM), jnp.float32)
    out2 = jax.block_until_ready(classification_model(x2, w1, b1, w2, b2))
    assert out2.shape == (B2, OUT_DIM)
    assert jnp.allclose(out2, _ref(x2, w1, b1, w2, b2), atol=1e-4, rtol=1e-4)

    print("KERNEL_OK")
</pallas_src>

<mosaic_0001>
module attributes {stable_mosaic.version = 11 : i64} {
  func.func @mlp_kernel(%arg0: i32, %arg1: memref<8x128xbf16, #tpu.memory_space<vmem>>, %arg2: memref<128x32xbf16, #tpu.memory_space<vmem>>, %arg3: memref<1x32xf32, #tpu.memory_space<vmem>>, %arg4: memref<32x6xf32, #tpu.memory_space<vmem>>, %arg5: memref<1x6xf32, #tpu.memory_space<vmem>>, %arg6: memref<8x6xf32, #tpu.memory_space<vmem>>) attributes {dimension_semantics = [#tpu.dimension_semantics<parallel>], iteration_bounds = array<i64: 1>, scalar_prefetch = 0 : i64, scratch_operands = 0 : i64, tpu.core_type = #tpu.core_type<tc>, window_params = [{transform_indices = @transform_0, window_bounds = array<i64: 8, 128>}, {pipeline_mode = #tpu.pipeline_mode<synchronous>, transform_indices = @transform_1, window_bounds = array<i64: 128, 32>}, {pipeline_mode = #tpu.pipeline_mode<synchronous>, transform_indices = @transform_2, window_bounds = array<i64: 1, 32>}, {pipeline_mode = #tpu.pipeline_mode<synchronous>, transform_indices = @transform_3, window_bounds = array<i64: 32, 6>}, {pipeline_mode = #tpu.pipeline_mode<synchronous>, transform_indices = @transform_4, window_bounds = array<i64: 1, 6>}, {transform_indices = @transform_5, window_bounds = array<i64: 8, 6>}]} {
    %c0 = arith.constant 0 : index
    %c0_0 = arith.constant 0 : index
    %0 = vector.load %arg1[%c0, %c0_0] : memref<8x128xbf16, #tpu.memory_space<vmem>>, vector<8x128xbf16>
    %c0_1 = arith.constant 0 : index
    %c0_2 = arith.constant 0 : index
    %1 = vector.load %arg2[%c0_1, %c0_2] : memref<128x32xbf16, #tpu.memory_space<vmem>>, vector<128x32xbf16>
    %cst = arith.constant dense<0.000000e+00> : vector<8x32xf32>
    %2 = tpu.matmul %0, %1, %cst {dimension_numbers = #tpu.dot_dimension_numbers<[1], [0], [0], [1], [0, 0, 1, 1], [], []>} : vector<8x128xbf16>, vector<128x32xbf16>, vector<8x32xf32> -> vector<8x32xf32>
    %c0_3 = arith.constant 0 : index
    %c0_4 = arith.constant 0 : index
    %3 = vector.load %arg3[%c0_3, %c0_4] : memref<1x32xf32, #tpu.memory_space<vmem>>, vector<1x32xf32>
    %4 = vector.broadcast %3 : vector<1x32xf32> to vector<8x32xf32>
    %5 = arith.addf %2, %4 : vector<8x32xf32>
    %cst_5 = arith.constant 0.000000e+00 : f32
    %6 = vector.broadcast %cst_5 : f32 to vector<8x32xf32>
    %7 = arith.maximumf %5, %6 : vector<8x32xf32>
    %c0_6 = arith.constant 0 : index
    %c0_7 = arith.constant 0 : index
    %8 = vector.load %arg4[%c0_6, %c0_7] : memref<32x6xf32, #tpu.memory_space<vmem>>, vector<32x6xf32>
    %cst_8 = arith.constant dense<0.000000e+00> : vector<8x6xf32>
    %9 = tpu.matmul %7, %8, %cst_8 {dimension_numbers = #tpu.dot_dimension_numbers<[1], [0], [0], [1], [0, 0, 1, 1], [], []>} : vector<8x32xf32>, vector<32x6xf32>, vector<8x6xf32> -> vector<8x6xf32>
    %c0_9 = arith.constant 0 : index
    %c0_10 = arith.constant 0 : index
    %10 = vector.load %arg5[%c0_9, %c0_10] : memref<1x6xf32, #tpu.memory_space<vmem>>, vector<1x6xf32>
    %11 = vector.broadcast %10 : vector<1x6xf32> to vector<8x6xf32>
    %12 = arith.addf %9, %11 : vector<8x6xf32>
    %c0_11 = arith.constant 0 : index
    %c0_12 = arith.constant 0 : index
    %13 = vector.load %arg6[%c0_11, %c0_12] : memref<8x6xf32, #tpu.memory_space<vmem>>, vector<8x6xf32>
    tpu.vector_store %arg6[%c0_11, %c0_12], %12 {strides = array<i32>} : memref<8x6xf32, #tpu.memory_space<vmem>>, vector<8x6xf32>,
    return
  }
  func.func @transform_0(%arg0: i32) -> (i32, i32) {
    %c0_i32 = arith.constant 0 : i32
    %c0_i32_0 = arith.constant 0 : i32
    return %arg0, %c0_i32 : i32, i32
  }
  func.func @transform_1(%arg0: i32) -> (i32, i32) {
    %c0_i32 = arith.constant 0 : i32
    %c0_i32_0 = arith.constant 0 : i32
    %c0_i32_1 = arith.constant 0 : i32
    return %c0_i32, %c0_i32_0 : i32, i32
  }
  func.func @transform_2(%arg0: i32) -> (i32, i32) {
    %c0_i32 = arith.constant 0 : i32
    %c0_i32_0 = arith.constant 0 : i32
    %c0_i32_1 = arith.constant 0 : i32
    return %c0_i32, %c0_i32_0 : i32, i32
  }
  func.func @transform_3(%arg0: i32) -> (i32, i32) {
    %c0_i32 = arith.constant 0 : i32
    %c0_i32_0 = arith.constant 0 : i32
    %c0_i32_1 = arith.constant 0 : i32
    return %c0_i32, %c0_i32_0 : i32, i32
  }
  func.func @transform_4(%arg0: i32) -> (i32, i32) {
    %c0_i32 = arith.constant 0 : i32
    %c0_i32_0 = arith.constant 0 : i32
    %c0_i32_1 = arith.constant 0 : i32
    return %c0_i32, %c0_i32_0 : i32, i32
  }
  func.func @transform_5(%arg0: i32) -> (i32, i32) {
    %c0_i32 = arith.constant 0 : i32
    %c0_i32_0 = arith.constant 0 : i32
    return %arg0, %c0_i32 : i32, i32
  }
}

</mosaic_0001>

<bundles_post_ra>
// kernel: tpu_custom_call.1
= control target key start
LH: loop header
LB: loop body
LE: loop exit
PB: predicated region body
PF: predicated region fallthrough
CT: control target
= control target key end

     0   :  { %s303_s0 = inlined_call_operand.vmem [shape: bf16[8,128], index: 0, kind: input, shape index: {}]   ;;  %s304_s1 = inlined_call_operand.vmem [shape: bf16[128,32], index: 1, kind: input, shape index: {}]   ;;  %s305_s2 = inlined_call_operand.vmem [shape: f32[1,32], index: 2, kind: input, shape index: {}]   ;;  %s306_s3 = inlined_call_operand.vmem [shape: f32[32,6], index: 3, kind: input, shape index: {}]   ;;  %s307_s4 = inlined_call_operand.vmem [shape: f32[1,6], index: 4, kind: input, shape index: {}]   ;;  %s308_s5 = inlined_call_operand.hbm [shape: f32[8,6], index: 5, kind: output, shape index: {}]  }
   0x1   :  { %v194_v0 = vld [vmem:[%s304_s1 + $0x38] sm:$0xff]  ;;  %v193_v1 = vld [vmem:[%s304_s1 + $0x30] sm:$0xff] }
   0x2   :  { %90 = vmatpush.bf16.msra.mxu0 %v194_v0  ;;  %v107_v2 = vld [vmem:[%s306_s3 + $0x18] sm:$0xff] }
   0x3   :  { %128 = vmatpush.msra.mxu1 %v107_v2 }
   0x4   :  { %10 = vsyncpa [#allocation3], 0  ;;  %v192_v3 = vld [vmem:[%s304_s1 + $0x28] sm:$0xff]  ;;  %v191_v4 = vld [vmem:[%s304_s1 + $0x20] sm:$0xff]  ;;  %vm112_vm0 = vcmask 261120   ;;  %s224_s21 = smov [#allocation2]  }
   0x5   :  { %v190_v5 = vld [vmem:[%s304_s1 + $0x18] sm:$0xff]  ;;  %v189_v6 = vld [vmem:[%s304_s1 + $0x10] sm:$0xff]  ;;  %v188_v7 = vld [vmem:[%s304_s1 + $0x8] sm:$0xff]  ;;  %s143_s22 = sshll.u32 %s224_s21, 4  ;;  %vm136_vm1 = vcmask 48128   ;;  %s144_s22 = int_to_ptr.vmem [resolvable:$true] %s143_s22 }
   0x6   :  { %91 = vmatpush.bf16.msra.mxu0 %v193_v1  ;;  %v187_v8 = vld [vmem:[%s304_s1] sm:$0xff]  ;;  %v106_v10 = vld [vmem:[%s306_s3 + $0x10] sm:$0xff]  ;;  %v105_v11 = vld [vmem:[%s306_s3 + $0x8] sm:$0xff] }
   0x7   :  { %v21_v9 = vld [vmem:[%s303_s0] sm:$0xf]  ;;  %129 = vmatpush.msra.mxu1 %v106_v10 }
   0x8   :  { %v104_v12 = vld [vmem:[%s306_s3] sm:$0xff]  ;;  %s145_s3 = sshll.u32 %s308_s5, 4  ;;  %s146_s3 = int_to_ptr.hbm [resolvable:$true] %s145_s3 }
   0x9   :  { %130 = vmatpush.msra.mxu1 %v105_v11  ;;  %v196_v13 = vld [vmem:[%s305_s2] ss:$0 sm:$0xff] }
   0xa   :  { %92 = vmatpush.bf16.msra.mxu0 %v192_v3  ;;  %v197_v18 = vld [vmem:[%s307_s4] ss:$0 sm:$0xff] }
   0xb   :  { %131 = vmatpush.msra.mxu1 %v104_v12 }
   0xe   :  { %93 = vmatpush.bf16.msra.mxu0 %v191_v4 }
  0x12   :  { %94 = vmatpush.bf16.msra.mxu0 %v190_v5 }
  0x16   :  { %95 = vmatpush.bf16.msra.mxu0 %v189_v6 }
  0x1a   :  { %96 = vmatpush.bf16.msra.mxu0 %v188_v7 }
  0x1e   :  { %97 = vmatpush.bf16.msra.mxu0 %v187_v8 }
  0x21   :  { %98 = vmatmul.bf16.vlgmr.msra.gmra.mxu0 %v21_v9 }
  0x9e   :  { %v99_v14 = vpop.f32.mrf.mxu0 }
  0x9f   :  { %v100_v15 = vadd.f32 %v196_v13, %v99_v14 }
  0xa1   :  { %v103_v16 = vmax.f32 %v100_v15, 0.0 }
  0xa3   :  { %186 = vmatmul.msk.f32.vlgmr.msra.gmra.mxu1 %vm112_vm0, %v103_v16 }
  0xa6   :  { %v101_v17 = vpop.f32.mrf.mxu0 }
 0x120   :  { %v133_v19 = vpop.f32.mrf.mxu1 }
 0x121   :  { %v134_v20 = vadd.f32 %v197_v18, %v133_v19 }
 0x123   :  { %137 = vst.msk [vmem:[#allocation2] sm:$0xff] %vm136_vm1, %v134_v20 }
 0x124   :  { %148 = dma.vmem_to_hbm [thread:$0]  %s144_s22, 128, %s146_s3, [#allocation3]  }
 0x125   :  { %222 = dma.done.wait [#allocation3], 128  }
 0x126   :  { %223 = vsyncadd [#allocation3], 4294967168 }
 0x127   :  { %153 = vsyncpa [#allocation3], 1 }

</bundles_post_ra>
